<compile_context>
chip_gen: v6e
topology: v6e:2x2x1
jax: 0.10.0
libtpu: 0.0.40
codegen_flags: <defaults>
</compile_context>

<pallas_src>
import functools

import jax
import jax.numpy as jnp
from jax.experimental import pallas as pl
from jax.experimental.pallas import tpu as pltpu


def _token_embedding_kernel(x_ref, w_ref, o_ref):
    # x_ref: (bb, L, 3C)   w_ref: (3C, d_blk)   o_ref: (bb, L, d_blk)
    bb, L, c3 = x_ref.shape
    out = jnp.dot(
        x_ref[...].reshape(bb * L, c3),
        w_ref[...],
        preferred_element_type=jnp.float32,
    )
    o_ref[...] = out.reshape(bb, L, -1).astype(o_ref.dtype)


def _round_up(n, m):
    return ((n + m - 1) // m) * m


def _cdiv(a, b):
    return (a + b - 1) // b


def _vmem_budgets():
    """(block_budget_bytes, vmem_limit_bytes) scaled to the chip generation."""
    try:
        info = pltpu.get_tpu_info()
        vmem = getattr(info, "vmem_capacity_bytes", None) or 64 * 2**20
    except Exception:  # no TPU info at trace time -> assume smallest (v7x) VMEM
        vmem = 64 * 2**20
    if vmem >= 100 * 2**20:            # v5e / v6e: 128 MiB physical VMEM
        return 40 * 2**20, 96 * 2**20
    return 16 * 2**20, 48 * 2**20      # v7x: 64 MiB physical per TensorCore


def _pick_blocks(B, L, c3, D, block_budget_bytes, min_total_steps=4):
    """Choose (batch_block, d_block).

    d_block stays a lane-dense multiple of 128 when possible; batch_block is
    the largest batch count whose double-buffered in/out blocks fit the
    per-generation VMEM budget, shrunk (never below 1) so the grid has at
    least `min_total_steps` steps (>= 2 per TensorCore on v7x's 2-TC chips).
    If even batch_block=1 exceeds the budget (huge L*D) we still return 1 and
    rely on vmem_limit_bytes; a compile-time VMEM error is the worst case.
    """
    if D > 512 and D % 128 == 0:
        d_blk = max(d for d in (512, 384, 256, 128) if D % d == 0)
    else:
        d_blk = D
    d_steps = _cdiv(D, d_blk)

    # Per-step VMEM: double-buffered x/out blocks (lane-padded to 128 in VMEM)
    # plus the small (double-buffered) weight tile.  No im2col temporary.
    w_bytes = 2 * _round_up(c3, 8) * _round_up(d_blk, 128) * 4
    per_bb = 2 * L * (_round_up(c3, 128) + _round_up(d_blk, 128)) * 4
    bb_max = max(1, (block_budget_bytes - w_bytes) // per_bb)
    bb_max = min(bb_max, B)

    # Prefer enough total grid steps for prefetch/writeback overlap.
    need_b_steps = max(1, _cdiv(min_total_steps, d_steps))
    bb = max(1, min(bb_max, _cdiv(B, need_b_steps)))
    return bb, d_blk


@functools.partial(jax.jit, static_argnames=("batch_block", "d_block"))
def token_embedding(x, weight, batch_block=None, d_block=None):
    """x: (B, L, C_in), weight: (3, C_in, D) -> (B, L, D)."""
    B, L, C = x.shape
    k3, wc, D = weight.shape
    assert k3 == 3 and wc == C
    c3 = 3 * C

    # im2col in the wrapper (one cheap, fused XLA op).  Kept at (B, L, 3C) --
    # NOT padded to 128 lanes in HBM -- so input reads stay ~3C/D of the
    # output bytes; lane padding only happens inside the VMEM tile.
    x_prev = jnp.roll(x, 1, axis=1)      # x[(t-1) mod L]
    x_next = jnp.roll(x, -1, axis=1)     # x[(t+1) mod L]
    x_cat = jnp.concatenate([x_prev, x, x_next], axis=-1)       # (B, L, 3C)
    w_flat = weight.reshape(c3, D)       # row order (k, c) matches x_cat lanes

    block_budget, vmem_limit = _vmem_budgets()
    bb, d_blk = _pick_blocks(B, L, c3, D, block_budget)
    if batch_block is not None:
        bb = batch_block
    if d_block is not None:
        d_blk = d_block
    if D % d_blk != 0:
        raise ValueError(f"d_block={d_blk} must divide d_model={D}")

    # Pad B up to a multiple of the batch block (instead of collapsing to
    # batch_block=1 or one giant step for prime/awkward B); slice result back.
    nb = _cdiv(B, bb)
    B_pad = nb * bb
    if B_pad != B:
        x_cat = jnp.pad(x_cat, ((0, B_pad - B), (0, 0), (0, 0)))
    nd = D // d_blk

    cost = pl.CostEstimate(
        flops=2 * B_pad * L * c3 * D,
        transcendentals=0,
        bytes_accessed=4 * (B_pad * L * c3 + c3 * D + B_pad * L * D),
    )

    out = pl.pallas_call(
        _token_embedding_kernel,
        out_shape=jax.ShapeDtypeStruct((B_pad, L, D), x.dtype),
        grid_spec=pltpu.PrefetchScalarGridSpec(
            num_scalar_prefetch=0,
            grid=(nb, nd),
            in_specs=[
                # x block constant across the d axis -> fetched once per batch
                # block; L and 3C are full array dims (circular wrap intact).
                pl.BlockSpec((bb, L, c3), lambda i, j: (i, 0, 0)),
                # Small weight tile, lane-dense along d.
                pl.BlockSpec((c3, d_blk), lambda i, j: (0, j)),
            ],
            out_specs=pl.BlockSpec((bb, L, d_blk), lambda i, j: (i, 0, j)),
        ),
        compiler_params=pltpu.CompilerParams(
            dimension_semantics=("parallel", "parallel"),
            vmem_limit_bytes=vmem_limit,
        ),
        cost_estimate=cost,
    )(x_cat, w_flat)

    return out[:B] if B_pad != B else out


def init_weight(key, c_in, d_model):
    """Deterministic kaiming_normal_(mode='fan_in', nonlinearity='leaky_relu')."""
    a = 0.01  # PyTorch default negative_slope used by kaiming init
    gain = (2.0 / (1.0 + a * a)) ** 0.5
    fan_in = c_in * 3
    std = gain / (fan_in ** 0.5)
    # PyTorch weight shape: (d_model, c_in, 3)
    w_torch = jax.random.normal(key, (d_model, c_in, 3), dtype=jnp.float32) * std
    # Pallas layout: (3, c_in, d_model)
    return jnp.transpose(w_torch, (2, 1, 0))


def reference(x, weight):
    """Pure-JAX reference of the circular conv (for correctness check)."""
    x_prev = jnp.roll(x, 1, axis=1)
    x_next = jnp.roll(x, -1, axis=1)
    return (jnp.einsum("blc,cd->bld", x_prev, weight[0])
            + jnp.einsum("blc,cd->bld", x, weight[1])
            + jnp.einsum("blc,cd->bld", x_next, weight[2]))


if __name__ == "__main__":
    # Small but layout-friendly shapes: L multiple of 8, d_model = 128
    # (lane-dense output), Autoformer-like c_in = 7.  B=4 -> batch_block=1,
    # grid=(4, 1): exercises batch blocking, megacore sharding and the
    # double-buffered pipeline.
    B, L, C_IN, D_MODEL = 4, 16, 7, 128

    key = jax.random.PRNGKey(0)
    kx, kw = jax.random.split(key)
    x = jax.random.normal(kx, (B, L, C_IN), dtype=jnp.float32)
    w = init_weight(kw, C_IN, D_MODEL)

    out = jax.block_until_ready(token_embedding(x, w))

    ref = reference(x, w)
    assert out.shape == (B, L, D_MODEL)
    assert jnp.allclose(out, ref, atol=1e-5, rtol=1e-5), float(
        jnp.max(jnp.abs(out - ref)))

    print("KERNEL_OK")
</pallas_src>

<mosaic_0001>
module attributes {stable_mosaic.version = 11 : i64} {
  func.func @_token_embedding_kernel(%arg0: i32, %arg1: i32, %arg2: memref<1x16x21xf32, #tpu.memory_space<vmem>>, %arg3: memref<21x128xf32, #tpu.memory_space<vmem>>, %arg4: memref<1x16x128xf32, #tpu.memory_space<vmem>>) attributes {dimension_semantics = [#tpu.dimension_semantics<parallel>, #tpu.dimension_semantics<parallel>], iteration_bounds = array<i64: 4, 1>, scalar_prefetch = 0 : i64, scratch_operands = 0 : i64, tpu.core_type = #tpu.core_type<tc>, window_params = [{transform_indices = @transform_0, window_bounds = array<i64: 1, 16, 21>}, {transform_indices = @transform_1, window_bounds = array<i64: 21, 128>}, {transform_indices = @transform_2, window_bounds = array<i64: 1, 16, 128>}]} {
    %c0 = arith.constant 0 : index
    %c0_0 = arith.constant 0 : index
    %c0_1 = arith.constant 0 : index
    %0 = vector.load %arg2[%c0, %c0_0, %c0_1] : memref<1x16x21xf32, #tpu.memory_space<vmem>>, vector<1x16x21xf32>
    %1 = vector.shape_cast %0 : vector<1x16x21xf32> to vector<16x21xf32>
    %c0_2 = arith.constant 0 : index
    %c0_3 = arith.constant 0 : index
    %2 = vector.load %arg3[%c0_2, %c0_3] : memref<21x128xf32, #tpu.memory_space<vmem>>, vector<21x128xf32>
    %cst = arith.constant dense<0.000000e+00> : vector<16x128xf32>
    %3 = tpu.matmul %1, %2, %cst {dimension_numbers = #tpu.dot_dimension_numbers<[1], [0], [0], [1], [0, 0, 1, 1], [], []>} : vector<16x21xf32>, vector<21x128xf32>, vector<16x128xf32> -> vector<16x128xf32>
    %4 = vector.shape_cast %3 : vector<16x128xf32> to vector<1x16x128xf32>
    %c0_4 = arith.constant 0 : index
    %c0_5 = arith.constant 0 : index
    %c0_6 = arith.constant 0 : index
    %5 = vector.load %arg4[%c0_4, %c0_5, %c0_6] : memref<1x16x128xf32, #tpu.memory_space<vmem>>, vector<1x16x128xf32>
    tpu.vector_store %arg4[%c0_4, %c0_5, %c0_6], %4 {strides = array<i32>} : memref<1x16x128xf32, #tpu.memory_space<vmem>>, vector<1x16x128xf32>,
    return
  }
  func.func @transform_0(%arg0: i32, %arg1: i32) -> (i32, i32, i32) {
    %c0_i32 = arith.constant 0 : i32
    %c0_i32_0 = arith.constant 0 : i32
    %c0_i32_1 = arith.constant 0 : i32
    return %arg0, %c0_i32, %c0_i32_0 : i32, i32, i32
  }
  func.func @transform_1(%arg0: i32, %arg1: i32) -> (i32, i32) {
    %c0_i32 = arith.constant 0 : i32
    %c0_i32_0 = arith.constant 0 : i32
    return %c0_i32, %arg1 : i32, i32
  }
  func.func @transform_2(%arg0: i32, %arg1: i32) -> (i32, i32, i32) {
    %c0_i32 = arith.constant 0 : i32
    %c0_i32_0 = arith.constant 0 : i32
    return %arg0, %c0_i32, %arg1 : i32, i32, i32
  }
}

</mosaic_0001>

<bundles_post_ra>
// kernel: token_embedding.1
= control target key start
LH: loop header
LB: loop body
LE: loop exit
PB: predicated region body
PF: predicated region fallthrough
CT: control target
= control target key end

     0   :  { %7 = vsyncpa [#allocation3], 0  ;;  %s677_s0 = inlined_call_operand.vmem [shape: f32[4,16,21], index: 0, kind: input, shape index: {}]   ;;  %s678_s1 = inlined_call_operand.vmem [shape: f32[21,128], index: 1, kind: input, shape index: {}]   ;;  %s679_s2 = inlined_call_operand.hbm [shape: f32[4,16,128], index: 2, kind: output, shape index: {}]  }
   0x1   :  { %9 = vsyncpa [#allocation3 + $0x1], 0  ;;  %s554_s9 = smov 0   ;;  %s556_s10 = smov 0  }
   0x2   :  { %s558_s11 = smov 0   ;;  %s560_s12 = smov 0  }
   0x3   :  { %s562_s13 = smov 0   ;;  %s564_s14 = smov 0  }
   0x4 LB: > { %s368_s15 = sadd.s32 4294967295, %s534_s14   ;;  %s369_s16 = sadd.s32 4294967294, %s534_s14   ;;  %s534_s14 = sphi %s564_s14, %s15_s14   ;;  %s530_s13 = sphi %s562_s13, %s686_s13   ;;  %s526_s12 = sphi %s560_s12, %s685_s12   ;;  %s522_s11 = sphi %s558_s11, %s684_s11   ;;  %s518_s10 = sphi %s556_s10, %s683_s10   ;;  %s514_s9 = sphi %s554_s9, %s682_s9  }
   0x5   : > { %s27_s17 = sadd.s32 1, %s530_s13  ;;  %s88_s18 = sadd.s32 1, %s522_s11 }
   0x6   : > { %p29_p0 = scmp.ge.s32.totalorder %s27_s17, 4  ;;  %p98_p1 = scmp.ne.s32.totalorder %s522_s11, %s518_s10 }
   0x7   : > { %p99_p2 = scmp.eq.s32.totalorder %s368_s15, 3  ;;  %p104_p3 = scmp.ne.s32.totalorder %s518_s10, %s514_s9 }
   0x8   : > { %s688_s17 = smov (%p29_p0, %s27_s17), 0  ;;  %p105_p5 = scmp.eq.s32.totalorder %s369_s16, 3 }
   0x9   : > { %p594_p4 = por %p99_p2, %p98_p1  ;;  %s83_s20 = ssub.s32 %s530_s13, %s688_s17 }
   0xa   : > { %p373_p6 = scmp.ge.s32.totalorder %s534_s14, 1  ;;  %p86_p7 = scmp.eq.s32.totalorder %s83_s20, 0 }
   0xb   : > { %p601_p8 = por %p105_p5, %p104_p3  ;;  %p138_p9 = scmp.lt.s32.totalorder %s534_s14, 5 }
   0xc   : > { %s607_s22 = scalar_select %p86_p7, %s522_s11, %s88_s18  }
   0xd   : > { %p139_p10 = pnand %p373_p6, %p138_p9 }
   0xe   : > { %p164_p11 = scmp.lt.s32.totalorder (!%p139_p10), %s526_s12, 3  ;;  %s161_s6 = sand.u32 (!%p139_p10), 1, %s518_s10  }
   0xf   : > { %142 = sbr.rel (%p139_p10) target bundleno = 236 (0xec), region = 28  ;;  %s374_s7 = sshll.u32 (!%p139_p10), %s161_s6, 4 }
  0x10   : > { %s163_s8 = scalar_lea.vmem (!%p139_p10), [#allocation2], %s374_s7  ;;  %s386_s16 = sshll.u32 (!%p139_p10), %s526_s12, 8 }
  0x11   : > { %s281_s15 = sshll.u32 (!%p139_p10), %s163_s8, 4  ;;  %s630_s23 = scalar_lea.hbm (!%p139_p10), %s679_s2, %s386_s16  ;;  %s625_s15 = int_to_ptr.vmem [resolvable:$true] %s281_s15 }
  0x12   : > { %s632_s24 = scalar_lea.sflag (!%p139_p10), [#allocation3], %s161_s6  ;;  %s458_s25 = scalar_lea.vmem (!%p139_p10), %s625_s15, 256 }
  0x13   : > { %p459_p12 = scmp.ne.s32.totalorder (!%p139_p10), %s625_s15, %s458_s25 }
  0x14   : > { %v177_v0 = vld [vmem:[%s678_s1 + $0x10] sm:$0x1f]  ;;  %vm185_vm0 = vcmask 1044480   ;;  %v176_v1 = vld [vmem:[%s678_s1 + $0x8] sm:$0xff]  ;;  %v175_v2 = vld [vmem:[%s678_s1] sm:$0xff]  ;;  %s165_s29 = scalar_select %p164_p11, %s526_s12, 3 }
  0x15   : > { %392 = vmatprep.subr.msk.mxu0 %vm185_vm0, %v177_v0  ;;  %vm178_vm1 = vcmask 171008   ;;  %p460_p13 = pnand %p459_p12, %p594_p4  ;;  %s536_s12 = smov [#allocation2]  }
  0x16   : > { %393 = vmatpush3.msk.msra.mxu0 %vm185_vm0, %v177_v0  ;;  %s385_s30 = sshll.u32 %s165_s29, 4  ;;  %s462_s26 = sshll.u32 %s536_s12, 4  ;;  %s463_s26 = int_to_ptr.vmem [resolvable:$false] %s462_s26 }
  0x17   : > { %394 = vmatprep.subr.mxu0 %v176_v1  ;;  %s168_s5 = scalar_lea.vmem %s677_s0, %s385_s30  ;;  %p461_p0 = pneg %p460_p13 }
  0x18   : > { %395 = vmatpush3.msra.mxu0 %v176_v1  ;;  %v173_v3 = vld [vmem:[%s168_s5] sm:$0xff]  ;;  %v174_v4 = vld [vmem:[%s168_s5 + $0x8] sm:$0xff]  ;;  %s464_s27 = scalar_lea.vmem %s463_s26, 512  ;;  %p465_p1 = scmp.lt.s32.totalorder %s625_s15, %s463_s26 }
  0x19   : > { %396 = vmatprep.subr.mxu0 %v175_v2  ;;  %398 = vmatprep.mubr.msk.f32.mxu0 %vm178_vm1, %v173_v3  ;;  %p466_p2 = scmp.lt.s32.totalorder %s464_s27, %s458_s25 }
  0x1a   : > { %397 = vmatpush3.msra.mxu0 %v175_v2 }
  0x1b   : > { %399 = vmatmul.mubr.msk.f32.vlgmr.msra.gmra.mxu0 %vm178_vm1, %v174_v4  ;;  %p467_p3 = por %p466_p2, %p465_p1 }
  0x1d   : > { %p468_p5 = pnand %p467_p3, %p461_p0 }
  0xdb   : > { %v400_v5 = vpop.f32.mrf.mxu0 }
  0xdc   : > { %265 = vst [vmem:[%s163_s8 + $0x8] sm:$0xff] %v400_v5 }
  0xdd   : > { %v255_v6 = vpop.f32.mrf.mxu0 }
  0xde   : > { %264 = vst [vmem:[%s163_s8] sm:$0xff] %v255_v6 }
  0xdf   : > { %471 = shalt.err (!%p468_p5)
}
  0xe0   : > { %s472_s28 = scalar_lea.hbm %s630_s23, 256  ;;  %s476_s3 = scalar_lea.hbm %s679_s2, 1024 }
  0xe1   : > { %p473_p6 = scmp.ne.s32.totalorder %s630_s23, %s472_s28  ;;  %p477_p10 = scmp.lt.s32.totalorder %s630_s23, %s679_s2 }
  0xe2   : > { %p478_p11 = scmp.lt.s32.totalorder %s476_s3, %s472_s28 }
  0xe3   : > { %p474_p7 = pnand %p473_p6, %p594_p4 }
  0xe4   : > { %p479_p12 = por %p478_p11, %p477_p10 }
  0xe5   : > { %p475_p9 = pneg %p474_p7 }
  0xe7   : > { %p480_p13 = pnand %p479_p12, %p475_p9 }
  0xe9   : > { %483 = shalt.err (!%p480_p13)
}
  0xea   : > { %s537_s6 = smov 128   ;;  %s538_s7 = smov 8  }
  0xeb   : > { %401 = dma.vmem_to_hbm [thread:$0]  (%p594_p4), %s625_s15, 256, %s630_s23, %s632_s24, %s537_s6, %s537_s6, %s538_s7  }
  0xec PF: > { %p407_p0 = scmp.ge.s32.totalorder %s534_s14, 2  ;;  %s296_s8 = sand.u32 1, %s514_s9  }
  0xed   : > { %s297_s16 = scalar_lea.sflag [#allocation3], %s296_s8 }
  0xee   : > { %p404_p1 = pnand %p407_p0, %p601_p8 }
  0xf0   : > { %p405_p2 = pneg %p404_p1 }
  0xf2   : > { %509 = dma.done.wait (%p405_p2), %s297_s16, 256  }
  0xf3   : > { %511 = vsyncadd (%p405_p2), %s297_s16, 4294967040  ;;  %s15_s14 = sadd.s32 1, %s534_s14   ;;  %s682_s9 = smov %s518_s10 }
  0xf4   : > { %p12_p3 = scmp.ge.s32.totalorder %s15_s14, 6   ;;  %s683_s10 = smov %s522_s11 }
  0xf5   : > { %s684_s11 = smov %s607_s22  ;;  %s685_s12 = smov %s530_s13 }
  0xf6   : > { %s686_s13 = smov %s688_s17  ;;  %14 = sbr.rel (!%p12_p3) target bundleno = 4 (0x4), region = 66 }
  0xfb   :  { %302 = vsyncpa [#allocation3], 1 }
  0xfc   :  { %304 = vsyncpa [#allocation3 + $0x1], 1 }

</bundles_post_ra>
